<compile_context>
chip_gen: v7x
topology: tpu7x:2x2x1
jax: 0.10.0
libtpu: 0.0.40
codegen_flags: <defaults>
</compile_context>

<pallas_src>
import functools

import jax
import jax.numpy as jnp
import numpy as np
from jax.experimental import pallas as pl
from jax.experimental.pallas import tpu as pltpu


# --------------------------- in-kernel helpers -----------------------------

def _row_scale(sumsq, dim_z):
    # sqrt(dim_z) / max(||row||_2, 1e-12)  ==  sqrt(dim_z) * rsqrt(max(sumsq, 1e-24))
    return jnp.sqrt(jnp.float32(dim_z)) * jax.lax.rsqrt(
        jnp.maximum(sumsq, jnp.float32(1e-24)))


# ------------------------------- kernels -----------------------------------

def _awgn_kernel(z_ref, n_ref, out_ref, *, dim_z, noise_stddev):
    # z_out = sqrt(dim_z) * z / ||z||_2 + stddev * N(0, 1)
    z = z_ref[...]
    scale = _row_scale(jnp.sum(z * z, axis=1, keepdims=True), dim_z)
    out_ref[...] = z * scale + jnp.float32(noise_stddev) * n_ref[...]


def _fading_kernel(z_ref, h_ref, n_ref, out_ref, *, dim_z, noise_stddev):
    # z = [zr | zi]; complex power-normalise to dim_z, y = h*z + stddev*awgn.
    # sum(z^2) over the full row equals sum(zr^2 + zi^2), so the norm is done on
    # the flat 2-D block.  One full-width lane-dense store.
    z = z_ref[...]                                            # (tb, 2*dim_z)
    scale = _row_scale(jnp.sum(z * z, axis=1, keepdims=True), dim_z)
    zs = z * scale
    zr = zs[:, :dim_z]
    zi = zs[:, dim_z:]
    hr = h_ref[:, 0:1]
    hi = h_ref[:, 1:2]
    c = jnp.float32(noise_stddev / np.sqrt(2.0))              # per-component std
    yr = hr * zr - hi * zi
    yi = hr * zi + hi * zr
    out_ref[...] = jnp.concatenate([yr, yi], axis=1) + c * n_ref[...]


def _fading_real_kernel(z_ref, h_ref, n_ref, out_ref, *, dim_z, noise_stddev):
    # z_in = sqrt(dim_z) * z / ||z||_2 ; y = h * z_in + N(0, stddev/sqrt(2))
    z = z_ref[...]
    scale = _row_scale(jnp.sum(z * z, axis=1, keepdims=True), dim_z)
    out_ref[...] = (h_ref[...] * (z * scale)
                    + jnp.float32(noise_stddev / np.sqrt(2.0)) * n_ref[...])


# ------------------------------- tiling ------------------------------------

def _vmem_budget_bytes():
    """Per-tile (double-buffered) VMEM budget, derived from the device when possible."""
    try:
        info = pltpu.get_tpu_info()
        cap = getattr(info, "vmem_capacity_bytes", None)
        if cap:
            # ~1/4 of physical VMEM, clamped: 12 MiB (v5e-safe) .. 24 MiB (v6e/v7x)
            return int(max(12 << 20, min(24 << 20, int(cap) // 4)))
    except Exception:
        pass
    return 12 << 20


def _batch_tile(batch, feat, n_streams=3):
    """Batch-tile size: as large as the VMEM budget allows (approach HBM roofline),
    but guarantee a multi-step grid for non-trivial B so DMA/compute overlap and the
    'parallel' axis can shard across both v7x TensorCores."""
    budget = _vmem_budget_bytes()
    row_bytes = max(1, n_streams * 2 * feat * 4)        # f32, x2 double buffering
    tb = (budget // row_bytes // 8) * 8
    tb = max(8, min(1024, tb))
    if batch >= 64:
        # keep at least ~4 grid steps (per-step overhead is only ~0.35 us)
        quarter = -(-batch // 4)
        tb = min(tb, max(8, ((quarter + 7) // 8) * 8))
    if tb >= batch:
        return batch                                     # single exact-fit block
    return tb


def _compiler_params(tb, feat, n_streams=3):
    footprint = n_streams * 2 * tb * feat * 4 + (1 << 20)   # double-buffered tiles + slack
    vmem_limit = int(min(max(2 * footprint, 16 << 20), 48 << 20))
    return pltpu.CompilerParams(dimension_semantics=("parallel",),
                                vmem_limit_bytes=vmem_limit)


def _cost(B, D, flops_per_elem):
    return pl.CostEstimate(flops=flops_per_elem * B * D,
                           transcendentals=B,                       # one rsqrt per row
                           bytes_accessed=3 * B * D * 4 + 2 * B * 4)


# ------------------------------- wrapper ------------------------------------

class ChannelPallas:
    """JAX/Pallas equivalent of the PyTorch `channel` module."""

    def __init__(self, channel_type, channel_snr):
        self.channel_type = channel_type
        self.channel_snr = channel_snr

    def __call__(self, z, key):
        z = z.astype(jnp.float32)
        noise_stddev = float(np.sqrt(10 ** (-self.channel_snr / 10)))
        B, D = z.shape
        k_noise, k_h = jax.random.split(key)
        # Standard-normal noise generated outside the kernel (scaled in-kernel).
        noise = jax.random.normal(k_noise, (B, D), jnp.float32)

        if self.channel_type == "awagn":
            # TODO(synk): original code also has a debug `print(type(z_in))` — omitted.
            tb = _batch_tile(B, D)
            out = pl.pallas_call(
                functools.partial(_awgn_kernel, dim_z=D, noise_stddev=noise_stddev),
                out_shape=jax.ShapeDtypeStruct((B, D), jnp.float32),
                grid=(pl.cdiv(B, tb),),
                in_specs=[pl.BlockSpec((tb, D), lambda i: (i, 0)),
                          pl.BlockSpec((tb, D), lambda i: (i, 0))],
                out_specs=pl.BlockSpec((tb, D), lambda i: (i, 0)),
                compiler_params=_compiler_params(tb, D),
                cost_estimate=_cost(B, D, 5),
            )(z, noise)
            return out

        elif self.channel_type == "fading":
            assert D % 2 == 0, "fading channel needs an even feature dimension"
            dim_z = D // 2
            h = (1.0 / np.sqrt(2.0)) * jax.random.normal(k_h, (B, 2), jnp.float32)
            tb = _batch_tile(B, D)
            out = pl.pallas_call(
                functools.partial(_fading_kernel, dim_z=dim_z,
                                  noise_stddev=noise_stddev),
                out_shape=jax.ShapeDtypeStruct((B, D), jnp.float32),
                grid=(pl.cdiv(B, tb),),
                in_specs=[pl.BlockSpec((tb, D), lambda i: (i, 0)),
                          pl.BlockSpec((tb, 2), lambda i: (i, 0)),
                          pl.BlockSpec((tb, D), lambda i: (i, 0))],
                out_specs=pl.BlockSpec((tb, D), lambda i: (i, 0)),
                compiler_params=_compiler_params(tb, D),
                cost_estimate=_cost(B, D, 10),
            )(z, h, noise)
            # cat([real, imag], dim=1) is already the in-kernel layout
            return out

        elif self.channel_type == "fading-real":
            dim_z = D // 2
            k_h1, k_h2 = jax.random.split(k_h)
            inv_sqrt2 = 1.0 / np.sqrt(2.0)
            n1 = inv_sqrt2 * jax.random.normal(k_h1, (B, 1), jnp.float32)
            n2 = inv_sqrt2 * jax.random.normal(k_h2, (B, 1), jnp.float32)
            h = jnp.sqrt(n1 * n1 + n2 * n2)
            tb = _batch_tile(B, D)
            out = pl.pallas_call(
                functools.partial(_fading_real_kernel, dim_z=dim_z,
                                  noise_stddev=noise_stddev),
                out_shape=jax.ShapeDtypeStruct((B, D), jnp.float32),
                grid=(pl.cdiv(B, tb),),
                in_specs=[pl.BlockSpec((tb, D), lambda i: (i, 0)),
                          pl.BlockSpec((tb, 1), lambda i: (i, 0)),
                          pl.BlockSpec((tb, D), lambda i: (i, 0))],
                out_specs=pl.BlockSpec((tb, D), lambda i: (i, 0)),
                compiler_params=_compiler_params(tb, D),
                cost_estimate=_cost(B, D, 6),
            )(z, h, noise)
            return out

        else:
            raise Exception("This option shouldn't be an option!")


# --------------------------------- main --------------------------------------

if __name__ == "__main__":
    key = jax.random.PRNGKey(0)
    k_data, k_awgn, k_fad, k_fadr = jax.random.split(key, 4)

    B, D = 2, 32          # small shapes; D even so the complex fading path works
    z = jax.random.normal(k_data, (B, D), jnp.float32)

    # AWGN channel (note: the original module spells it 'awagn')
    ch_awgn = ChannelPallas("awagn", channel_snr=10.0)
    y_awgn = jax.block_until_ready(ch_awgn(z, k_awgn))
    assert y_awgn.shape == (B, D)

    # Complex Rayleigh fading channel
    ch_fad = ChannelPallas("fading", channel_snr=10.0)
    y_fad = jax.block_until_ready(ch_fad(z, k_fad))
    assert y_fad.shape == (B, D)

    # Phase-invariant (real) fading channel
    ch_fadr = ChannelPallas("fading-real", channel_snr=10.0)
    y_fadr = jax.block_until_ready(ch_fadr(z, k_fadr))
    assert y_fadr.shape == (B, D)

    # sanity: outputs finite
    assert bool(jnp.all(jnp.isfinite(y_awgn)))
    assert bool(jnp.all(jnp.isfinite(y_fad)))
    assert bool(jnp.all(jnp.isfinite(y_fadr)))

    print("KERNEL_OK")
</pallas_src>

<mosaic_0001>
module attributes {stable_mosaic.version = 11 : i64} {
  func.func @_awgn_kernel(%arg0: i32, %arg1: memref<2x32xf32, #tpu.memory_space<vmem>>, %arg2: memref<2x32xf32, #tpu.memory_space<vmem>>, %arg3: memref<2x32xf32, #tpu.memory_space<vmem>>) attributes {dimension_semantics = [#tpu.dimension_semantics<parallel>], iteration_bounds = array<i64: 1>, scalar_prefetch = 0 : i64, scratch_operands = 0 : i64, tpu.core_type = #tpu.core_type<tc>, window_params = [{transform_indices = @transform_0, window_bounds = array<i64: 2, 32>}, {transform_indices = @transform_1, window_bounds = array<i64: 2, 32>}, {transform_indices = @transform_2, window_bounds = array<i64: 2, 32>}]} {
    %c0 = arith.constant 0 : index
    %c0_0 = arith.constant 0 : index
    %0 = vector.load %arg1[%c0, %c0_0] : memref<2x32xf32, #tpu.memory_space<vmem>>, vector<2x32xf32>
    %1 = arith.mulf %0, %0 : vector<2x32xf32>
    %cst = arith.constant dense<0.000000e+00> : vector<2xf32>
    %2 = vector.multi_reduction <add>, %1, %cst [1] : vector<2x32xf32> to vector<2xf32>
    %3 = vector.shape_cast %2 : vector<2xf32> to vector<2x1xf32>
    %cst_1 = arith.constant 3.200000e+01 : f32
    %4 = math.sqrt %cst_1 : f32
    %cst_2 = arith.constant 1.000000e-24 : f32
    %5 = vector.broadcast %cst_2 : f32 to vector<2x1xf32>
    %6 = arith.maximumf %3, %5 : vector<2x1xf32>
    %7 = math.rsqrt %6 : vector<2x1xf32>
    %8 = vector.broadcast %4 : f32 to vector<2x1xf32>
    %9 = arith.mulf %8, %7 : vector<2x1xf32>
    %10 = vector.broadcast %9 : vector<2x1xf32> to vector<2x32xf32>
    %11 = arith.mulf %0, %10 : vector<2x32xf32>
    %c0_3 = arith.constant 0 : index
    %c0_4 = arith.constant 0 : index
    %12 = vector.load %arg2[%c0_3, %c0_4] : memref<2x32xf32, #tpu.memory_space<vmem>>, vector<2x32xf32>
    %cst_5 = arith.constant 0.316227764 : f32
    %13 = vector.broadcast %cst_5 : f32 to vector<2x32xf32>
    %14 = arith.mulf %13, %12 : vector<2x32xf32>
    %15 = arith.addf %11, %14 : vector<2x32xf32>
    %c0_6 = arith.constant 0 : index
    %c0_7 = arith.constant 0 : index
    %16 = vector.load %arg3[%c0_6, %c0_7] : memref<2x32xf32, #tpu.memory_space<vmem>>, vector<2x32xf32>
    tpu.vector_store %arg3[%c0_6, %c0_7], %15 {strides = array<i32>} : memref<2x32xf32, #tpu.memory_space<vmem>>, vector<2x32xf32>,
    return
  }
  func.func @transform_0(%arg0: i32) -> (i32, i32) {
    %c0_i32 = arith.constant 0 : i32
    %c0_i32_0 = arith.constant 0 : i32
    return %arg0, %c0_i32 : i32, i32
  }
  func.func @transform_1(%arg0: i32) -> (i32, i32) {
    %c0_i32 = arith.constant 0 : i32
    %c0_i32_0 = arith.constant 0 : i32
    return %arg0, %c0_i32 : i32, i32
  }
  func.func @transform_2(%arg0: i32) -> (i32, i32) {
    %c0_i32 = arith.constant 0 : i32
    %c0_i32_0 = arith.constant 0 : i32
    return %arg0, %c0_i32 : i32, i32
  }
}

</mosaic_0001>

<bundles_post_ra>
// kernel: tpu_custom_call.1
= control target key start
LH: loop header
LB: loop body
LE: loop exit
PB: predicated region body
PF: predicated region fallthrough
CT: control target
= control target key end

     0   :  { %7 = vsyncpa [#allocation3], 0  ;;  %s151_s0 = inlined_call_operand.hbm [shape: f32[2,32], index: 0, kind: input, shape index: {}]   ;;  %s152_s1 = inlined_call_operand.vmem [shape: f32[2,32], index: 1, kind: input, shape index: {}]   ;;  %s153_s2 = inlined_call_operand.hbm [shape: f32[2,32], index: 2, kind: output, shape index: {}]  }
   0x1   :  { %8 = vsyncpa [#allocation4], 0  ;;  %s105_s9 = smov [#allocation2]   ;;  %s57_s13 = scalar_lea.hbm %s151_s0, 32 }
   0x2   :  { %s15_s10 = sshll.u32 %s105_s9, 4  ;;  %p58_p0 = scmp.ne.s32.totalorder %s151_s0, %s57_s13  ;;  %s16_s10 = int_to_ptr.vmem [resolvable:$true] %s15_s10 }
   0x3   :  { %p61_p1 = scmp.lt.u32.totalorder %s57_s13, %s151_s0 }
   0x5   :  { %p63_p2 = pnand %p61_p1, %p58_p0 }
   0x7   :  { %66 = shalt.err (!%p63_p2)
}
   0x8   :  { %s67_s18 = scalar_lea.vmem %s16_s10, 32  ;;  %p72_p4 = scmp.lt.s32.totalorder %s16_s10, %s16_s10 }
   0x9   :  { %p68_p3 = scmp.ne.s32.totalorder %s16_s10, %s67_s18  ;;  %p73_p5 = scmp.lt.s32.totalorder %s67_s18, %s67_s18 }
   0xb   :  { %p74_p6 = por %p73_p5, %p72_p4 }
   0xd   :  { %p75_p7 = pnand %p74_p6, %p68_p3 }
   0xf   :  { %78 = shalt.err (!%p75_p7)
}
  0x10   :  { %18 = dma.hbm_to_vmem [thread:$0]  %s151_s0, 32, %s16_s10, [#allocation3]  }
  0x11   :  { %101 = dma.done.wait [#allocation3], 32  }
  0x12   :  { %102 = vsyncadd [#allocation3], 4294967264  ;;  %v24_v0 = vld [vmem:[#allocation2] sm:$0x3]  ;;  %vm26_vm0 = vcmask 254976   ;;  %s106_s23 = smov [#allocation5]  }
  0x13   :  { %v25_v1 = vmul.f32 %v24_v0, %v24_v0  ;;  %v34_v5 = vld [vmem:[%s152_s1] sm:$0x3]  ;;  %s44_s0 = sshll.u32 %s106_s23, 4  ;;  %s45_s0 = int_to_ptr.vmem [resolvable:$true] %s44_s0 }
  0x14   :  { %v35_v8 = vmul.f32 0.31622776, %v34_v5  ;;  %s79_s24 = scalar_lea.vmem %s45_s0, 32  ;;  %p84_p9 = scmp.lt.s32.totalorder %s45_s0, %s45_s0 }
  0x15   :  { %v27_v2 = vsel %vm26_vm0, %v25_v1, 0.0  ;;  %p80_p8 = scmp.ne.s32.totalorder %s45_s0, %s79_s24  ;;  %p85_p10 = scmp.lt.s32.totalorder %s79_s24, %s79_s24 }
  0x16   :  { %28 = vadd.xlane.f32.xlu0 %v27_v2 }
  0x17   :  { %p86_p11 = por %p85_p10, %p84_p9 }
  0x19   :  { %p87_p12 = pnand %p86_p11, %p80_p8 }
  0xa3   :  { %v29_v3 = vpop.xlane.xlu0 %28 }
  0xa4   :  { %v30_v4 = vmax.f32 %v29_v3, 1e-24 }
  0xa6   :  { %55 = vrsqrt.f32 %v30_v4 }
  0xb0   :  { %v56_v6 = vpop.eup %55 }
  0xb1   :  { %v32_v7 = vmul.f32 5.656854, %v56_v6 }
  0xb3   :  { %v33_v9 = vmul.f32 %v32_v7, %v24_v0 }
  0xb5   :  { %v36_v10 = vadd.f32 %v35_v8, %v33_v9 }
  0xb7   :  { %37 = vst.msk [vmem:[#allocation5] sm:$0x3] %vm26_vm0, %v36_v10 }
  0xb8   :  { %90 = shalt.err (!%p87_p12)
}
  0xb9   :  { %s91_s1 = scalar_lea.hbm %s153_s2, 32 }
  0xba   :  { %p92_p13 = scmp.ne.s32.totalorder %s153_s2, %s91_s1  ;;  %p95_p0 = scmp.lt.u32.totalorder %s91_s1, %s153_s2 }
  0xbc   :  { %p97_p1 = pnand %p95_p0, %p92_p13 }
  0xbe   :  { %100 = shalt.err (!%p97_p1)
}
  0xbf   :  { %47 = dma.vmem_to_hbm [thread:$0]  %s45_s0, 32, %s153_s2, [#allocation4]  }
  0xc0   :  { %103 = dma.done.wait [#allocation4], 32  }
  0xc1   :  { %104 = vsyncadd [#allocation4], 4294967264 }
  0xc2   :  { %51 = vsyncpa [#allocation3], 1 }
  0xc3   :  { %52 = vsyncpa [#allocation4], 1 }

</bundles_post_ra>
